<compile_context>
chip_gen: v6e
topology: v6e:2x2x1
jax: 0.10.0
libtpu: 0.0.40
codegen_flags: <defaults>
</compile_context>

<pallas_src>
import functools
import math

import jax
import jax.numpy as jnp
from jax import lax
from jax.experimental import pallas as pl
from jax.experimental.pallas import tpu as pltpu


# ----------------------------------------------------------------------------
# Fused Pallas kernel
# ----------------------------------------------------------------------------
def _cross_attention_kernel(x_ref, ctx_ref, wq_ref, wkv_ref, wo_ref, bo_ref,
                            o_ref, k_scr, v_scr, *, heads, dim_head, scale):
    # x_ref   : (1, TQ, Dq)     query tile for the current (batch, q-tile)
    # ctx_ref : (1, Nk, Dc)     full context for the current batch element
    # wq_ref  : (Dq, inner)     wkv_ref: (Dc, 2*inner)  [Wk | Wv] fused
    # wo_ref  : (inner, Dout)   bo_ref : (1, Dout)
    # o_ref   : (1, TQ, Dout)
    # k_scr/v_scr : VMEM (Nk, inner) f32 — projected K/V, resident across q-tiles.
    inner = heads * dim_head

    # Project K and V once per batch element (first q-tile only) with a single
    # wide matmul so the MXU sees N = 2*inner.
    @pl.when(pl.program_id(1) == 0)
    def _():
        kv = jnp.dot(ctx_ref[0], wkv_ref[...],
                     preferred_element_type=jnp.float32)        # (Nk, 2*inner)
        k_scr[...] = kv[:, :inner]
        v_scr[...] = kv[:, inner:]

    tq = x_ref.shape[1]
    d_out = o_ref.shape[2]

    # Q projection for this tile; fold the attention scale in once (VPU slack).
    q = jnp.dot(x_ref[0], wq_ref[...],
                preferred_element_type=jnp.float32) * scale     # (TQ, inner)
    k = k_scr[...]                                              # (Nk, inner)
    v = v_scr[...]
    wo = wo_ref[...]                                            # (inner, Dout)

    acc = jnp.zeros((tq, d_out), jnp.float32)
    for h in range(heads):                      # static unroll; heads is small
        sl = slice(h * dim_head, (h + 1) * dim_head)
        # scores = Qh @ Kh^T   (contract the head dim of both operands)
        s = lax.dot_general(q[:, sl], k[:, sl], (((1,), (1,)), ((), ())),
                            preferred_element_type=jnp.float32)  # (TQ, Nk)
        # numerically stable softmax over the key axis
        s = s - jnp.max(s, axis=-1, keepdims=True)
        p = jnp.exp(s)
        p = p * (1.0 / jnp.sum(p, axis=-1, keepdims=True))
        oh = jnp.dot(p, v[:, sl], preferred_element_type=jnp.float32)  # (TQ, d)
        # Fold this head directly into the output projection (block matmul),
        # avoiding a lane-axis concatenate of per-head outputs.
        acc = acc + jnp.dot(oh, wo[sl, :], preferred_element_type=jnp.float32)

    o_ref[0] = (acc + bo_ref[...]).astype(o_ref.dtype)


# ----------------------------------------------------------------------------
# pallas_call wrapper
# ----------------------------------------------------------------------------
def _cross_attention_pallas(x, context, params, *, heads, dim_head, q_tile=None):
    B, Nq, Dq = x.shape
    Bc, Nk, Dc = context.shape
    assert Bc == B
    inner = heads * dim_head
    wq, wo, bo = params["wq"], params["wo"], params["bo"]
    # Fuse the K and V projection weights so the in-kernel context projection
    # is one MXU call with full N width.
    wkv = jnp.concatenate([params["wk"], params["wv"]], axis=1)   # (Dc, 2*inner)
    d_out = wo.shape[1]

    # Tile the query axis only when it is long and cleanly divisible; otherwise
    # use the full sequence as one block (block == full dim is always legal).
    if q_tile is None:
        q_tile = 128 if (Nq > 128 and Nq % 128 == 0) else Nq
    assert Nq % q_tile == 0
    n_q_tiles = Nq // q_tile

    kernel = functools.partial(_cross_attention_kernel, heads=heads,
                               dim_head=dim_head, scale=dim_head ** (-0.5))

    return pl.pallas_call(
        kernel,
        out_shape=jax.ShapeDtypeStruct((B, Nq, d_out), x.dtype),
        grid=(B, n_q_tiles),
        in_specs=[
            pl.BlockSpec((1, q_tile, Dq), lambda b, qi: (b, qi, 0)),   # x tile
            pl.BlockSpec((1, Nk, Dc), lambda b, qi: (b, 0, 0)),        # context
            pl.BlockSpec((Dq, inner), lambda b, qi: (0, 0)),           # Wq
            pl.BlockSpec((Dc, 2 * inner), lambda b, qi: (0, 0)),       # [Wk|Wv]
            pl.BlockSpec((inner, d_out), lambda b, qi: (0, 0)),        # Wo
            pl.BlockSpec((1, d_out), lambda b, qi: (0, 0)),            # b_out
        ],
        out_specs=pl.BlockSpec((1, q_tile, d_out), lambda b, qi: (b, qi, 0)),
        scratch_shapes=[
            pltpu.VMEM((Nk, inner), jnp.float32),   # projected K (per batch)
            pltpu.VMEM((Nk, inner), jnp.float32),   # projected V (per batch)
        ],
        compiler_params=pltpu.CompilerParams(
            dimension_semantics=("parallel", "arbitrary")),
    )(x, context, wq, wkv, wo, bo.reshape(1, d_out))


# ----------------------------------------------------------------------------
# Module-level forward (mirrors CrossAttention.forward semantics)
# ----------------------------------------------------------------------------
def cross_attention_forward(x, params, *, heads, dim_head, context=None,
                            mask=None, additional_tokens=None,
                            n_times_crossframe_attn_in_self=0):
    if mask is not None:
        # TODO(synk): additive attention-mask support (needs masked softmax in-kernel).
        raise NotImplementedError("mask is not supported")

    n_tokens_to_mask = 0
    if additional_tokens is not None:
        n_tokens_to_mask = additional_tokens.shape[1]
        x = jnp.concatenate([additional_tokens, x], axis=1)

    ctx = x if context is None else context

    if n_times_crossframe_attn_in_self:
        # k/v projections are row-wise, so repeating the projected k/v of every
        # n-th batch element == projecting the repeated context rows.
        assert x.shape[0] % n_times_crossframe_attn_in_self == 0
        n_cp = x.shape[0] // n_times_crossframe_attn_in_self
        ctx = jnp.repeat(ctx[::n_times_crossframe_attn_in_self], n_cp, axis=0)

    out = _cross_attention_pallas(x, ctx, params, heads=heads, dim_head=dim_head)

    if additional_tokens is not None:
        out = out[:, n_tokens_to_mask:]
    # to_out Dropout: identity in eval mode.
    return out


# ----------------------------------------------------------------------------
# Parameter init (PyTorch nn.Linear-style uniform; weights stored as (in, out))
# ----------------------------------------------------------------------------
def init_cross_attention_params(key, query_dim, context_dim, heads, dim_head):
    inner = heads * dim_head
    ks = jax.random.split(key, 5)

    def lin(k, fan_in, fan_out):
        bound = 1.0 / math.sqrt(fan_in)
        return jax.random.uniform(k, (fan_in, fan_out), jnp.float32, -bound, bound)

    return dict(
        wq=lin(ks[0], query_dim, inner),
        wk=lin(ks[1], context_dim, inner),
        wv=lin(ks[2], context_dim, inner),
        wo=lin(ks[3], inner, query_dim),
        bo=jax.random.uniform(ks[4], (query_dim,), jnp.float32,
                              -1.0 / math.sqrt(inner), 1.0 / math.sqrt(inner)),
    )


# ----------------------------------------------------------------------------
# Pure-JAX reference (for the self-check)
# ----------------------------------------------------------------------------
def cross_attention_ref(x, context, params, *, heads, dim_head):
    ctx = x if context is None else context
    hp = lax.Precision.HIGHEST
    q = jnp.matmul(x, params["wq"], precision=hp)
    k = jnp.matmul(ctx, params["wk"], precision=hp)
    v = jnp.matmul(ctx, params["wv"], precision=hp)

    def split(t):
        b, n, _ = t.shape
        return jnp.transpose(t.reshape(b, n, heads, dim_head), (0, 2, 1, 3))

    qh, kh, vh = split(q), split(k), split(v)
    s = jnp.einsum("bhqd,bhkd->bhqk", qh, kh, precision=hp) * dim_head ** (-0.5)
    p = jax.nn.softmax(s, axis=-1)
    o = jnp.einsum("bhqk,bhkd->bhqd", p, vh, precision=hp)
    b, _, nq, _ = o.shape
    o = jnp.transpose(o, (0, 2, 1, 3)).reshape(b, nq, heads * dim_head)
    return jnp.matmul(o, params["wo"], precision=hp) + params["bo"]


# ----------------------------------------------------------------------------
if __name__ == "__main__":
    key = jax.random.PRNGKey(0)

    B = 2
    seq_q, seq_kv = 16, 8
    query_dim, context_dim = 128, 64
    heads, dim_head = 4, 32          # inner_dim = 128 (lane-dense)

    k1, k2, k3 = jax.random.split(key, 3)
    x = jax.random.normal(k1, (B, seq_q, query_dim), jnp.float32)
    context = jax.random.normal(k2, (B, seq_kv, context_dim), jnp.float32)
    params = init_cross_attention_params(k3, query_dim, context_dim, heads, dim_head)

    # Cross-attention path.
    out = cross_attention_forward(x, params, heads=heads, dim_head=dim_head,
                                  context=context)
    out = jax.block_until_ready(out)
    assert out.shape == (B, seq_q, query_dim), out.shape
    ref = cross_attention_ref(x, context, params, heads=heads, dim_head=dim_head)
    assert jnp.allclose(out, ref, atol=1e-3, rtol=1e-3), float(
        jnp.max(jnp.abs(out - ref)))

    # Self-attention path (context=None -> context_dim == query_dim).
    params_self = init_cross_attention_params(k3, query_dim, query_dim,
                                              heads, dim_head)
    out_self = jax.block_until_ready(
        cross_attention_forward(x, params_self, heads=heads, dim_head=dim_head))
    ref_self = cross_attention_ref(x, None, params_self,
                                   heads=heads, dim_head=dim_head)
    assert jnp.allclose(out_self, ref_self, atol=1e-3, rtol=1e-3)

    # Longer query sequence exercises the q-tiled / VMEM-resident K-V path.
    xl = jax.random.normal(k1, (B, 256, query_dim), jnp.float32)
    out_l = jax.block_until_ready(
        cross_attention_forward(xl, params, heads=heads, dim_head=dim_head,
                                context=context))
    ref_l = cross_attention_ref(xl, context, params, heads=heads,
                                dim_head=dim_head)
    assert jnp.allclose(out_l, ref_l, atol=1e-3, rtol=1e-3)

    print("KERNEL_OK")
</pallas_src>

<mosaic_0001>
module attributes {stable_mosaic.version = 11 : i64} {
  func.func @_cross_attention_kernel(%arg0: i32, %arg1: i32, %arg2: memref<1x16x128xf32, #tpu.memory_space<vmem>>, %arg3: memref<1x8x64xf32, #tpu.memory_space<vmem>>, %arg4: memref<128x128xf32, #tpu.memory_space<vmem>>, %arg5: memref<64x256xf32, #tpu.memory_space<vmem>>, %arg6: memref<128x128xf32, #tpu.memory_space<vmem>>, %arg7: memref<1x128xf32, #tpu.memory_space<vmem>>, %arg8: memref<1x16x128xf32, #tpu.memory_space<vmem>>, %arg9: memref<8x128xf32, #tpu.memory_space<vmem>>, %arg10: memref<8x128xf32, #tpu.memory_space<vmem>>) attributes {dimension_semantics = [#tpu.dimension_semantics<parallel>, #tpu.dimension_semantics<arbitrary>], iteration_bounds = array<i64: 2, 1>, scalar_prefetch = 0 : i64, scratch_operands = 2 : i64, tpu.core_type = #tpu.core_type<tc>, window_params = [{transform_indices = @transform_0, window_bounds = array<i64: 1, 16, 128>}, {transform_indices = @transform_1, window_bounds = array<i64: 1, 8, 64>}, {pipeline_mode = #tpu.pipeline_mode<synchronous>, transform_indices = @transform_2, window_bounds = array<i64: 128, 128>}, {pipeline_mode = #tpu.pipeline_mode<synchronous>, transform_indices = @transform_3, window_bounds = array<i64: 64, 256>}, {pipeline_mode = #tpu.pipeline_mode<synchronous>, transform_indices = @transform_4, window_bounds = array<i64: 128, 128>}, {pipeline_mode = #tpu.pipeline_mode<synchronous>, transform_indices = @transform_5, window_bounds = array<i64: 1, 128>}, {transform_indices = @transform_6, window_bounds = array<i64: 1, 16, 128>}]} {
    %c0_i32 = arith.constant 0 : i32
    %0 = arith.cmpi eq, %arg1, %c0_i32 : i32
    %1 = arith.extui %0 : i1 to i32
    %c0_i32_0 = arith.constant 0 : i32
    %2 = arith.cmpi ne, %1, %c0_i32_0 : i32
    scf.if %2 {
      %c0_42 = arith.constant 0 : index
      %c0_43 = arith.constant 0 : index
      %c0_44 = arith.constant 0 : index
      %95 = vector.load %arg3[%c0_42, %c0_43, %c0_44] : memref<1x8x64xf32, #tpu.memory_space<vmem>>, vector<1x8x64xf32>
      %96 = vector.shape_cast %95 : vector<1x8x64xf32> to vector<8x64xf32>
      %c0_45 = arith.constant 0 : index
      %c0_46 = arith.constant 0 : index
      %97 = vector.load %arg5[%c0_45, %c0_46] : memref<64x256xf32, #tpu.memory_space<vmem>>, vector<64x256xf32>
      %cst_47 = arith.constant dense<0.000000e+00> : vector<8x256xf32>
      %98 = tpu.matmul %96, %97, %cst_47 {dimension_numbers = #tpu.dot_dimension_numbers<[1], [0], [0], [1], [0, 0, 1, 1], [], []>} : vector<8x64xf32>, vector<64x256xf32>, vector<8x256xf32> -> vector<8x256xf32>
      %99 = vector.extract_strided_slice %98 {offsets = [0, 0], sizes = [8, 128], strides = [1, 1]} : vector<8x256xf32> to vector<8x128xf32>
      %c0_48 = arith.constant 0 : index
      %c0_49 = arith.constant 0 : index
      %100 = vector.load %arg9[%c0_48, %c0_49] : memref<8x128xf32, #tpu.memory_space<vmem>>, vector<8x128xf32>
      tpu.vector_store %arg9[%c0_48, %c0_49], %99 {strides = array<i32>} : memref<8x128xf32, #tpu.memory_space<vmem>>, vector<8x128xf32>,
      %101 = vector.extract_strided_slice %98 {offsets = [0, 128], sizes = [8, 128], strides = [1, 1]} : vector<8x256xf32> to vector<8x128xf32>
      %c0_50 = arith.constant 0 : index
      %c0_51 = arith.constant 0 : index
      %102 = vector.load %arg10[%c0_50, %c0_51] : memref<8x128xf32, #tpu.memory_space<vmem>>, vector<8x128xf32>
      tpu.vector_store %arg10[%c0_50, %c0_51], %101 {strides = array<i32>} : memref<8x128xf32, #tpu.memory_space<vmem>>, vector<8x128xf32>,
    } else {
    }
    %c0 = arith.constant 0 : index
    %c0_1 = arith.constant 0 : index
    %c0_2 = arith.constant 0 : index
    %3 = vector.load %arg2[%c0, %c0_1, %c0_2] : memref<1x16x128xf32, #tpu.memory_space<vmem>>, vector<1x16x128xf32>
    %4 = vector.shape_cast %3 : vector<1x16x128xf32> to vector<16x128xf32>
    %c0_3 = arith.constant 0 : index
    %c0_4 = arith.constant 0 : index
    %5 = vector.load %arg4[%c0_3, %c0_4] : memref<128x128xf32, #tpu.memory_space<vmem>>, vector<128x128xf32>
    %cst = arith.constant dense<0.000000e+00> : vector<16x128xf32>
    %6 = tpu.matmul %4, %5, %cst {dimension_numbers = #tpu.dot_dimension_numbers<[1], [0], [0], [1], [0, 0, 1, 1], [], []>} : vector<16x128xf32>, vector<128x128xf32>, vector<16x128xf32> -> vector<16x128xf32>
    %cst_5 = arith.constant 0.176776692 : f32
    %7 = vector.broadcast %cst_5 : f32 to vector<16x128xf32>
    %8 = arith.mulf %6, %7 : vector<16x128xf32>
    %c0_6 = arith.constant 0 : index
    %c0_7 = arith.constant 0 : index
    %9 = vector.load %arg9[%c0_6, %c0_7] : memref<8x128xf32, #tpu.memory_space<vmem>>, vector<8x128xf32>
    %c0_8 = arith.constant 0 : index
    %c0_9 = arith.constant 0 : index
    %10 = vector.load %arg10[%c0_8, %c0_9] : memref<8x128xf32, #tpu.memory_space<vmem>>, vector<8x128xf32>
    %c0_10 = arith.constant 0 : index
    %c0_11 = arith.constant 0 : index
    %11 = vector.load %arg6[%c0_10, %c0_11] : memref<128x128xf32, #tpu.memory_space<vmem>>, vector<128x128xf32>
    %cst_12 = arith.constant 0.000000e+00 : f32
    %12 = vector.broadcast %cst_12 : f32 to vector<16x128xf32>
    %13 = vector.extract_strided_slice %8 {offsets = [0, 0], sizes = [16, 32], strides = [1, 1]} : vector<16x128xf32> to vector<16x32xf32>
    %14 = vector.extract_strided_slice %9 {offsets = [0, 0], sizes = [8, 32], strides = [1, 1]} : vector<8x128xf32> to vector<8x32xf32>
    %cst_13 = arith.constant dense<0.000000e+00> : vector<16x8xf32>
    %15 = tpu.matmul %13, %14, %cst_13 {dimension_numbers = #tpu.dot_dimension_numbers<[1], [1], [0], [0], [0, 0, 1, 0], [], []>} : vector<16x32xf32>, vector<8x32xf32>, vector<16x8xf32> -> vector<16x8xf32>
    %cst_14 = arith.constant dense<0xFF800000> : vector<16xf32>
    %16 = vector.multi_reduction <maximumf>, %15, %cst_14 [1] : vector<16x8xf32> to vector<16xf32>
    %17 = vector.shape_cast %16 : vector<16xf32> to vector<16x1xf32>
    %18 = vector.broadcast %17 : vector<16x1xf32> to vector<16x8xf32>
    %19 = arith.subf %15, %18 : vector<16x8xf32>
    %20 = math.exp %19 : vector<16x8xf32>
    %cst_15 = arith.constant dense<0.000000e+00> : vector<16xf32>
    %21 = vector.multi_reduction <add>, %20, %cst_15 [1] : vector<16x8xf32> to vector<16xf32>
    %22 = vector.shape_cast %21 : vector<16xf32> to vector<16x1xf32>
    %cst_16 = arith.constant 1.000000e+00 : f32
    %23 = vector.broadcast %cst_16 : f32 to vector<16x1xf32>
    %24 = arith.divf %23, %22 : vector<16x1xf32>
    %25 = vector.broadcast %24 : vector<16x1xf32> to vector<16x8xf32>
    %26 = arith.mulf %20, %25 : vector<16x8xf32>
    %27 = vector.extract_strided_slice %10 {offsets = [0, 0], sizes = [8, 32], strides = [1, 1]} : vector<8x128xf32> to vector<8x32xf32>
    %cst_17 = arith.constant dense<0.000000e+00> : vector<16x32xf32>
    %28 = tpu.matmul %26, %27, %cst_17 {dimension_numbers = #tpu.dot_dimension_numbers<[1], [0], [0], [1], [0, 0, 1, 1], [], []>} : vector<16x8xf32>, vector<8x32xf32>, vector<16x32xf32> -> vector<16x32xf32>
    %29 = vector.extract_strided_slice %11 {offsets = [0, 0], sizes = [32, 128], strides = [1, 1]} : vector<128x128xf32> to vector<32x128xf32>
    %cst_18 = arith.constant dense<0.000000e+00> : vector<16x128xf32>
    %30 = tpu.matmul %28, %29, %cst_18 {dimension_numbers = #tpu.dot_dimension_numbers<[1], [0], [0], [1], [0, 0, 1, 1], [], []>} : vector<16x32xf32>, vector<32x128xf32>, vector<16x128xf32> -> vector<16x128xf32>
    %31 = arith.addf %12, %30 : vector<16x128xf32>
    %32 = vector.extract_strided_slice %8 {offsets = [0, 32], sizes = [16, 32], strides = [1, 1]} : vector<16x128xf32> to vector<16x32xf32>
    %33 = vector.extract_strided_slice %9 {offsets = [0, 32], sizes = [8, 32], strides = [1, 1]} : vector<8x128xf32> to vector<8x32xf32>
    %cst_19 = arith.constant dense<0.000000e+00> : vector<16x8xf32>
    %34 = tpu.matmul %32, %33, %cst_19 {dimension_numbers = #tpu.dot_dimension_numbers<[1], [1], [0], [0], [0, 0, 1, 0], [], []>} : vector<16x32xf32>, vector<8x32xf32>, vector<16x8xf32> -> vector<16x8xf32>
    %cst_20 = arith.constant dense<0xFF800000> : vector<16xf32>
    %35 = vector.multi_reduction <maximumf>, %34, %cst_20 [1] : vector<16x8xf32> to vector<16xf32>
    %36 = vector.shape_cast %35 : vector<16xf32> to vector<16x1xf32>
    %37 = vector.broadcast %36 : vector<16x1xf32> to vector<16x8xf32>
    %38 = arith.subf %34, %37 : vector<16x8xf32>
    %39 = math.exp %38 : vector<16x8xf32>
    %cst_21 = arith.constant dense<0.000000e+00> : vector<16xf32>
    %40 = vector.multi_reduction <add>, %39, %cst_21 [1] : vector<16x8xf32> to vector<16xf32>
    %41 = vector.shape_cast %40 : vector<16xf32> to vector<16x1xf32>
    %cst_22 = arith.constant 1.000000e+00 : f32
    %42 = vector.broadcast %cst_22 : f32 to vector<16x1xf32>
    %43 = arith.divf %42, %41 : vector<16x1xf32>
    %44 = vector.broadcast %43 : vector<16x1xf32> to vector<16x8xf32>
    %45 = arith.mulf %39, %44 : vector<16x8xf32>
    %46 = vector.extract_strided_slice %10 {offsets = [0, 32], sizes = [8, 32], strides = [1, 1]} : vector<8x128xf32> to vector<8x32xf32>
    %cst_23 = arith.constant dense<0.000000e+00> : vector<16x32xf32>
    %47 = tpu.matmul %45, %46, %cst_23 {dimension_numbers = #tpu.dot_dimension_numbers<[1], [0], [0], [1], [0, 0, 1, 1], [], []>} : vector<16x8xf32>, vector<8x32xf32>, vector<16x32xf32> -> vector<16x32xf32>
    %48 = vector.extract_strided_slice %11 {offsets = [32, 0], sizes = [32, 128], strides = [1, 1]} : vector<128x128xf32> to vector<32x128xf32>
    %cst_24 = arith.constant dense<0.000000e+00> : vector<16x128xf32>
    %49 = tpu.matmul %47, %48, %cst_24 {dimension_numbers = #tpu.dot_dimension_numbers<[1], [0], [0], [1], [0, 0, 1, 1], [], []>} : vector<16x32xf32>, vector<32x128xf32>, vector<16x128xf32> -> vector<16x128xf32>
    %50 = arith.addf %31, %49 : vector<16x128xf32>
    %51 = vector.extract_strided_slice %8 {offsets = [0, 64], sizes = [16, 32], strides = [1, 1]} : vector<16x128xf32> to vector<16x32xf32>
    %52 = vector.extract_strided_slice %9 {offsets = [0, 64], sizes = [8, 32], strides = [1, 1]} : vector<8x128xf32> to vector<8x32xf32>
    %cst_25 = arith.constant dense<0.000000e+00> : vector<16x8xf32>
    %53 = tpu.matmul %51, %52, %cst_25 {dimension_numbers = #tpu.dot_dimension_numbers<[1], [1], [0], [0], [0, 0, 1, 0], [], []>} : vector<16x32xf32>, vector<8x32xf32>, vector<16x8xf32> -> vector<16x8xf32>
    %cst_26 = arith.constant dense<0xFF800000> : vector<16xf32>
    %54 = vector.multi_reduction <maximumf>, %53, %cst_26 [1] : vector<16x8xf32> to vector<16xf32>
    %55 = vector.shape_cast %54 : vector<16xf32> to vector<16x1xf32>
    %56 = vector.broadcast %55 : vector<16x1xf32> to vector<16x8xf32>
    %57 = arith.subf %53, %56 : vector<16x8xf32>
    %58 = math.exp %57 : vector<16x8xf32>
    %cst_27 = arith.constant dense<0.000000e+00> : vector<16xf32>
    %59 = vector.multi_reduction <add>, %58, %cst_27 [1] : vector<16x8xf32> to vector<16xf32>
    %60 = vector.shape_cast %59 : vector<16xf32> to vector<16x1xf32>
    %cst_28 = arith.constant 1.000000e+00 : f32
    %61 = vector.broadcast %cst_28 : f32 to vector<16x1xf32>
    %62 = arith.divf %61, %60 : vector<16x1xf32>
    %63 = vector.broadcast %62 : vector<16x1xf32> to vector<16x8xf32>
    %64 = arith.mulf %58, %63 : vector<16x8xf32>
    %65 = vector.extract_strided_slice %10 {offsets = [0, 64], sizes = [8, 32], strides = [1, 1]} : vector<8x128xf32> to vector<8x32xf32>
    %cst_29 = arith.constant dense<0.000000e+00> : vector<16x32xf32>
    %66 = tpu.matmul %64, %65, %cst_29 {dimension_numbers = #tpu.dot_dimension_numbers<[1], [0], [0], [1], [0, 0, 1, 1], [], []>} : vector<16x8xf32>, vector<8x32xf32>, vector<16x32xf32> -> vector<16x32xf32>
    %67 = vector.extract_strided_slice %11 {offsets = [64, 0], sizes = [32, 128], strides = [1, 1]} : vector<128x128xf32> to vector<32x128xf32>
    %cst_30 = arith.constant dense<0.000000e+00> : vector<16x128xf32>
    %68 = tpu.matmul %66, %67, %cst_30 {dimension_numbers = #tpu.dot_dimension_numbers<[1], [0], [0], [1], [0, 0, 1, 1], [], []>} : vector<16x32xf32>, vector<32x128xf32>, vector<16x128xf32> -> vector<16x128xf32>
    %69 = arith.addf %50, %68 : vector<16x128xf32>
    %70 = vector.extract_strided_slice %8 {offsets = [0, 96], sizes = [16, 32], strides = [1, 1]} : vector<16x128xf32> to vector<16x32xf32>
    %71 = vector.extract_strided_slice %9 {offsets = [0, 96], sizes = [8, 32], strides = [1, 1]} : vector<8x128xf32> to vector<8x32xf32>
    %cst_31 = arith.constant dense<0.000000e+00> : vector<16x8xf32>
    %72 = tpu.matmul %70, %71, %cst_31 {dimension_numbers = #tpu.dot_dimension_numbers<[1], [1], [0], [0], [0, 0, 1, 0], [], []>} : vector<16x32xf32>, vector<8x32xf32>, vector<16x8xf32> -> vector<16x8xf32>
    %cst_32 = arith.constant dense<0xFF800000> : vector<16xf32>
    %73 = vector.multi_reduction <maximumf>, %72, %cst_32 [1] : vector<16x8xf32> to vector<16xf32>
    %74 = vector.shape_cast %73 : vector<16xf32> to vector<16x1xf32>
    %75 = vector.broadcast %74 : vector<16x1xf32> to vector<16x8xf32>
    %76 = arith.subf %72, %75 : vector<16x8xf32>
    %77 = math.exp %76 : vector<16x8xf32>
    %cst_33 = arith.constant dense<0.000000e+00> : vector<16xf32>
    %78 = vector.multi_reduction <add>, %77, %cst_33 [1] : vector<16x8xf32> to vector<16xf32>
    %79 = vector.shape_cast %78 : vector<16xf32> to vector<16x1xf32>
    %cst_34 = arith.constant 1.000000e+00 : f32
    %80 = vector.broadcast %cst_34 : f32 to vector<16x1xf32>
    %81 = arith.divf %80, %79 : vector<16x1xf32>
    %82 = vector.broadcast %81 : vector<16x1xf32> to vector<16x8xf32>
    %83 = arith.mulf %77, %82 : vector<16x8xf32>
    %84 = vector.extract_strided_slice %10 {offsets = [0, 96], sizes = [8, 32], strides = [1, 1]} : vector<8x128xf32> to vector<8x32xf32>
    %cst_35 = arith.constant dense<0.000000e+00> : vector<16x32xf32>
    %85 = tpu.matmul %83, %84, %cst_35 {dimension_numbers = #tpu.dot_dimension_numbers<[1], [0], [0], [1], [0, 0, 1, 1], [], []>} : vector<16x8xf32>, vector<8x32xf32>, vector<16x32xf32> -> vector<16x32xf32>
    %86 = vector.extract_strided_slice %11 {offsets = [96, 0], sizes = [32, 128], strides = [1, 1]} : vector<128x128xf32> to vector<32x128xf32>
    %cst_36 = arith.constant dense<0.000000e+00> : vector<16x128xf32>
    %87 = tpu.matmul %85, %86, %cst_36 {dimension_numbers = #tpu.dot_dimension_numbers<[1], [0], [0], [1], [0, 0, 1, 1], [], []>} : vector<16x32xf32>, vector<32x128xf32>, vector<16x128xf32> -> vector<16x128xf32>
    %88 = arith.addf %69, %87 : vector<16x128xf32>
    %c0_37 = arith.constant 0 : index
    %c0_38 = arith.constant 0 : index
    %89 = vector.load %arg7[%c0_37, %c0_38] : memref<1x128xf32, #tpu.memory_space<vmem>>, vector<1x128xf32>
    %90 = vector.broadcast %89 : vector<1x128xf32> to vector<16x128xf32>
    %91 = arith.addf %88, %90 : vector<16x128xf32>
    %c0_39 = arith.constant 0 : index
    %c0_40 = arith.constant 0 : index
    %c0_41 = arith.constant 0 : index
    %92 = vector.load %arg8[%c0_39, %c0_40, %c0_41] : memref<1x16x128xf32, #tpu.memory_space<vmem>>, vector<1x16x128xf32>
    %93 = vector.shape_cast %92 : vector<1x16x128xf32> to vector<16x128xf32>
    %94 = vector.shape_cast %91 : vector<16x128xf32> to vector<1x16x128xf32>
    tpu.vector_store %arg8[%c0_39, %c0_40, %c0_41], %94 {strides = array<i32>} : memref<1x16x128xf32, #tpu.memory_space<vmem>>, vector<1x16x128xf32>,
    return
  }
  func.func @transform_0(%arg0: i32, %arg1: i32) -> (i32, i32, i32) {
    %c0_i32 = arith.constant 0 : i32
    %c0_i32_0 = arith.constant 0 : i32
    return %arg0, %arg1, %c0_i32 : i32, i32, i32
  }
  func.func @transform_1(%arg0: i32, %arg1: i32) -> (i32, i32, i32) {
    %c0_i32 = arith.constant 0 : i32
    %c0_i32_0 = arith.constant 0 : i32
    %c0_i32_1 = arith.constant 0 : i32
    return %arg0, %c0_i32, %c0_i32_0 : i32, i32, i32
  }
  func.func @transform_2(%arg0: i32, %arg1: i32) -> (i32, i32) {
    %c0_i32 = arith.constant 0 : i32
    %c0_i32_0 = arith.constant 0 : i32
    %c0_i32_1 = arith.constant 0 : i32
    return %c0_i32, %c0_i32_0 : i32, i32
  }
  func.func @transform_3(%arg0: i32, %arg1: i32) -> (i32, i32) {
    %c0_i32 = arith.constant 0 : i32
    %c0_i32_0 = arith.constant 0 : i32
    %c0_i32_1 = arith.constant 0 : i32
    return %c0_i32, %c0_i32_0 : i32, i32
  }
  func.func @transform_4(%arg0: i32, %arg1: i32) -> (i32, i32) {
    %c0_i32 = arith.constant 0 : i32
    %c0_i32_0 = arith.constant 0 : i32
    %c0_i32_1 = arith.constant 0 : i32
    return %c0_i32, %c0_i32_0 : i32, i32
  }
  func.func @transform_5(%arg0: i32, %arg1: i32) -> (i32, i32) {
    %c0_i32 = arith.constant 0 : i32
    %c0_i32_0 = arith.constant 0 : i32
    %c0_i32_1 = arith.constant 0 : i32
    return %c0_i32, %c0_i32_0 : i32, i32
  }
  func.func @transform_6(%arg0: i32, %arg1: i32) -> (i32, i32, i32) {
    %c0_i32 = arith.constant 0 : i32
    %c0_i32_0 = arith.constant 0 : i32
    return %arg0, %arg1, %c0_i32 : i32, i32, i32
  }
}

</mosaic_0001>

<bundles_post_ra>
// kernel: tpu_custom_call.1
= control target key start
LH: loop header
LB: loop body
LE: loop exit
PB: predicated region body
PF: predicated region fallthrough
CT: control target
= control target key end

     0   :  { %s2850_s0 = inlined_call_operand.hbm [shape: f32[2,16,128], index: 0, kind: input, shape index: {}]   ;;  %s2851_s1 = inlined_call_operand.hbm [shape: f32[2,8,64], index: 1, kind: input, shape index: {}]   ;;  %s2852_s2 = inlined_call_operand.hbm [shape: f32[128,128], index: 2, kind: input, shape index: {}]   ;;  %s2853_s3 = inlined_call_operand.hbm [shape: f32[64,256], index: 3, kind: input, shape index: {}]   ;;  %s2854_s4 = inlined_call_operand.hbm [shape: f32[128,128], index: 4, kind: input, shape index: {}]   ;;  %s2855_s5 = inlined_call_operand.vmem [shape: f32[1,128], index: 5, kind: input, shape index: {}]   ;;  %s2856_s6 = inlined_call_operand.hbm [shape: f32[2,16,128], index: 6, kind: output, shape index: {}]  }
   0x1   :  { %2863 = sst [smem:[#allocation23_spill]] %s2850_s0 }
   0x2   :  { %2864 = sst [smem:[#allocation24_spill]] %s2852_s2 }
   0x3   :  { %2865 = sst [smem:[#allocation25_spill]] %s2853_s3 }
   0x4   :  { %2866 = sst [smem:[#allocation26_spill]] %s2854_s4 }
   0x5   :  { %11 = vsyncpa [#allocation5], 0 }
   0x6   :  { %13 = vsyncpa [#allocation5 + $0x1], 0 }
   0x7   :  { %14 = vsyncpa [#allocation8], 0 }
   0x8   :  { %16 = vsyncpa [#allocation8 + $0x1], 0 }
   0x9   :  { %17 = vsyncpa [#allocation11], 0 }
   0xa   :  { %18 = vsyncpa [#allocation6], 0 }
   0xb   :  { %20 = vsyncpa [#allocation6 + $0x1], 0  ;;  %s2511_s21 = smov 0   ;;  %s2513_s22 = smov 0  }
   0xc   :  { %s2515_s23 = smov 0   ;;  %s2517_s24 = smov 0  }
   0xd   :  { %s2519_s25 = smov 0   ;;  %s2521_s26 = smov 0  }
   0xe LB: > { %2867 = sst [smem:[#allocation19_spill]] %s2446_s23  ;;  %s2542_s27 = sadd.s32 4294967295, %s2458_s26   ;;  %s2458_s26 = sphi %s2521_s26, %s26_s26   ;;  %s2454_s25 = sphi %s2519_s25, %s2892_s25   ;;  %s2450_s24 = sphi %s2517_s24, %s2891_s24   ;;  %s2446_s23 = sphi %s2515_s23, %s2887_s23   ;;  %s2442_s22 = sphi %s2513_s22, %s2890_s22   ;;  %s2438_s21 = sphi %s2511_s21, %s2889_s21  }
   0xf   : > { %2868 = sst [smem:[#allocation20_spill]] %s2458_s26  ;;  %s1852_s28 = sadd.s32 4294967294, %s2458_s26  }
  0x10   : > { %p60_p0 = scmp.ne.s32.totalorder %s2442_s22, %s2438_s21  ;;  %p61_p1 = scmp.eq.s32.totalorder %s2542_s27, 0 }
  0x11   : > { %p196_p2 = scmp.eq.s32.totalorder %s2542_s27, 1  ;;  %p202_p3 = scmp.eq.s32.totalorder %s1852_s28, 1 }
  0x12   : > { %p2551_p4 = por %p61_p1, %p60_p0  ;;  %p1853_p5 = scmp.ge.s32.totalorder %s2458_s26, 1 }
  0x13   : > { %p2556_p6 = por %p202_p3, %p60_p0  ;;  %p209_p7 = scmp.lt.s32.totalorder %s2458_s26, 3 }
  0x14   : > { %s2460_s8 = smov [#allocation9]   ;;  %s2461_s11 = smov [#allocation10]  }
  0x15   : > { %p2561_p8 = pnand %p1853_p5, %p209_p7  ;;  %s221_s9 = sshll.u32 %s2460_s8, 4  ;;  %s222_s9 = int_to_ptr.vmem [resolvable:$true] %s221_s9 }
  0x16   : > { %s234_s12 = sshll.u32 %s2461_s11, 4  ;;  %s2243_s13 = scalar_lea.vmem %s222_s9, 2048  ;;  %s235_s12 = int_to_ptr.vmem [resolvable:$true] %s234_s12 }
  0x17   : > { %p2110_p9 = pneg %p2561_p8  ;;  %p2244_p13 = scmp.ne.s32.totalorder %s222_s9, %s2243_s13 }
  0x18   : > { %p2251_p5 = scmp.lt.s32.totalorder %s222_s9, %s222_s9  ;;  %p2252_p7 = scmp.lt.s32.totalorder %s2243_s13, %s2243_s13 }
  0x19   : > { %p2570_p11 = pnand %p2110_p9, %p61_p1 }
  0x1a   : > { %p2253_p10 = por %p2252_p7, %p2251_p5 }
  0x1b   : > { %p2234_p12 = pneg %p2570_p11 }
  0x1d   : > { %p2246_p0 = pnand %p2244_p13, %p2234_p12 }
  0x1f   : > { %p2247_p3 = pneg %p2246_p0 }
  0x21   : > { %p2254_p9 = pnand %p2253_p10, %p2247_p3 }
  0x23   : > { %2257 = shalt.err (!%p2254_p9)
}
  0x24   : > { %s2857_s14 = smov 128   ;;  %s2858_s15 = smov 8  }
  0x25   : > { %s2873_s2 = sld [smem:[#allocation24_spill]]  ;;  %s2269_s18 = scalar_lea.vmem %s235_s12, 2048 }
  0x26   : > { %p2270_p13 = scmp.ne.s32.totalorder %s235_s12, %s2269_s18  ;;  %p2277_p10 = scmp.lt.s32.totalorder %s235_s12, %s235_s12 }
  0x27   : > { %p2278_p3 = scmp.lt.s32.totalorder %s2269_s18, %s2269_s18 }
  0x28   : > { %p2272_p0 = pnand %p2270_p13, %p2234_p12 }
  0x29   : > { %p2279_p7 = por %p2278_p3, %p2277_p10 }
  0x2a   : > { %p2273_p5 = pneg %p2272_p0 }
  0x2b   : > { %2113 = dma.hbm_to_vmem [thread:$0]  (!%p2570_p11), %s2873_s2, 2048, %s222_s9, [#allocation8], %s2857_s14, %s2857_s14, %s2858_s15  }
  0x2c   : > { %p2280_p9 = pnand %p2279_p7, %p2273_p5 }
  0x2e   : > { %2283 = shalt.err (!%p2280_p9)
}
  0x2f   : > { %s2464_s19 = smov 256   ;;  %s2465_s20 = smov 16  }
  0x30   : > { %s2874_s3 = sld [smem:[#allocation25_spill]]  ;;  %s2466_s9 = smov [#allocation12]  }
  0x31   : > { %s247_s11 = sshll.u32 %s2466_s9, 4  ;;  %s248_s11 = int_to_ptr.vmem [resolvable:$true] %s247_s11 }
  0x32   : > { %s2295_s13 = scalar_lea.vmem %s248_s11, 2048  ;;  %p2303_p5 = scmp.lt.s32.totalorder %s248_s11, %s248_s11 }
  0x33   : > { %p2296_p13 = scmp.ne.s32.totalorder %s248_s11, %s2295_s13  ;;  %p2304_p3 = scmp.lt.s32.totalorder %s2295_s13, %s2295_s13 }
  0x35   : > { %p2298_p0 = pnand %p2296_p13, %p2234_p12  ;;  %p2305_p7 = por %p2304_p3, %p2303_p5 }
  0x36   : > { %2116 = dma.hbm_to_vmem [thread:$0]  (!%p2570_p11), %s2874_s3, 2048, %s235_s12, [#allocation11], %s2464_s19, %s2464_s19, %s2465_s20  }
  0x37   : > { %p2299_p10 = pneg %p2298_p0 }
  0x39   : > { %p2306_p9 = pnand %p2305_p7, %p2299_p10 }
  0x3b   : > { %2309 = shalt.err (!%p2306_p9)
}
  0x3c   : > { %s2875_s4 = sld [smem:[#allocation26_spill]]  ;;  %s38_s17 = sadd.s32 1, %s2454_s25 }
  0x3d   : > { %p40_p12 = scmp.ge.s32.totalorder %s38_s17, 2  ;;  %s47_s10 = sadd.s32 1, %s2446_s23 }
  0x3e   : > { %p54_p13 = scmp.ne.s32.totalorder %s2446_s23, %s2442_s22  ;;  %p55_p0 = scmp.eq.s32.totalorder %s2458_s26, 0 }
  0x3f   : > { %s2894_s17 = smov (%p40_p12, %s38_s17), 0  ;;  %s2627_s28 = sand.u32 1, %s2446_s23  }
  0x40   : > { %2876 = sst [smem:[#allocation21_spill]] %s2894_s17  ;;  %p2613_p10 = por %p55_p0, %p54_p13 }
  0x41   : > { %p2619_p5 = por %p196_p2, %p54_p13  ;;  %s42_s20 = ssub.s32 %s2454_s25, %s2894_s17 }
  0x42   : > { %2119 = dma.hbm_to_vmem [thread:$0]  (!%p2570_p11), %s2875_s4, 2048, %s248_s11, [#allocation11], %s2857_s14, %s2857_s14, %s2858_s15  }
  0x43   : > { %p2134_p11 = scmp.lt.s32.totalorder %s2458_s26, 2  ;;  %p45_p3 = scmp.eq.s32.totalorder %s42_s20, 0 }
  0x44   : > { %s1858_s8 = sshll.u32 %s2627_s28, 4  ;;  %s1905_s11 = sshll.u32 %s2454_s25, 8 }
  0x45   : > { %s2631_s9 = scalar_select %p45_p3, %s2446_s23, %s47_s10  }
  0x46   : > { %s2880_s0 = sld [smem:[#allocation23_spill]]  ;;  %s268_s14 = scalar_lea.vmem [#allocation4], %s1858_s8 }
  0x47   : > { %2879 = sst [smem:[#allocation22_spill]] %s2631_s9  ;;  %s277_s15 = sshll.u32 %s268_s14, 4  ;;  %s278_s15 = int_to_ptr.vmem [resolvable:$true] %s277_s15 }
  0x48   : > { %p2639_p2 = pnand %p2134_p11, %p2613_p10  ;;  %s287_s20 = sand.u32 1, %s2458_s26  }
  0x49   : > { %s1861_s3 = sshll.u32 %s2627_s28, 3  ;;  %s265_s4 = scalar_lea.sflag [#allocation5], %s2627_s28 }
  0x4a   : > { %p2312_p7 = pneg %p2639_p2  ;;  %s2323_s10 = scalar_lea.vmem %s278_s15, 256 }
  0x4b   : > { %p2324_p9 = scmp.ne.s32.totalorder %s278_s15, %s2323_s10  ;;  %s2467_s14 = smov [#allocation4]  }
  0x4c   : > { %s276_s16 = scalar_lea.hbm %s2880_s0, %s1905_s11  ;;  %s2328_s8 = sshll.u32 %s2467_s14, 4  ;;  %s2329_s8 = int_to_ptr.vmem [resolvable:$false] %s2328_s8 }
  0x4d   : > { %p2326_p12 = pnand %p2324_p9, %p2312_p7  ;;  %s2330_s18 = scalar_lea.vmem %s2329_s8, 512 }
  0x4e   : > { %p2331_p0 = scmp.lt.s32.totalorder %s278_s15, %s2329_s8  ;;  %p2332_p10 = scmp.lt.s32.totalorder %s2330_s18, %s2323_s10 }
  0x4f   : > { %p2327_p13 = pneg %p2326_p12 }
  0x50   : > { %p2333_p11 = por %p2332_p10, %p2331_p0 }
  0x52   : > { %p2334_p3 = pnand %p2333_p11, %p2327_p13 }
  0x54   : > { %2337 = shalt.err (!%p2334_p3)
}
  0x55   : > { %s2882_s28 = smov 8   ;;  %s2883_s11 = smov 128  }
  0x56   : > { %2123 = dma.hbm_to_vmem [thread:$0]  (!%p2639_p2), %s276_s16, 256, %s278_s15, %s265_s4, %s2883_s11, %s2883_s11, %s2882_s28  }
  0x57   : > { %s1862_s13 = sshll.u32 %s2454_s25, 7  ;;  %s291_s17 = scalar_lea.vmem [#allocation7], %s1861_s3 }
  0x58   : > { %s296_s14 = scalar_lea.hbm %s2851_s1, %s1862_s13  ;;  %s298_s9 = sshll.u32 %s291_s17, 4  ;;  %s299_s9 = int_to_ptr.vmem [resolvable:$true] %s298_s9 }
  0x59   : > { %s288_s10 = scalar_lea.sflag [#allocation8], %s287_s20  ;;  %s2351_s8 = scalar_lea.vmem %s299_s9, 128 }
  0x5a   : > { %p2352_p9 = scmp.ne.s32.totalorder %s299_s9, %s2351_s8  ;;  %s2468_s18 = smov [#allocation7]  }
  0x5b   : > { %s2356_s23 = sshll.u32 %s2468_s18, 4  ;;  %s2357_s23 = int_to_ptr.vmem [resolvable:$false] %s2356_s23 }
  0x5c   : > { %p2354_p12 = pnand %p2352_p9, %p2312_p7  ;;  %s2358_s26 = scalar_lea.vmem %s2357_s23, 256 }
  0x5d   : > { %p2359_p0 = scmp.lt.s32.totalorder %s299_s9, %s2357_s23  ;;  %p2360_p10 = scmp.lt.s32.totalorder %s2358_s26, %s2351_s8 }
  0x5e   : > { %p2355_p13 = pneg %p2354_p12 }
  0x5f   : > { %p2361_p11 = por %p2360_p10, %p2359_p0 }
  0x61   : > { %p2362_p3 = pnand %p2361_p11, %p2355_p13 }
  0x63   : > { %2365 = shalt.err (!%p2362_p3)
}
  0x64   : > { %2126 = dma.hbm_to_vmem [thread:$0]  (!%p2639_p2), %s296_s14, 128, %s299_s9, %s288_s10  }
  0x65   : > { %307 = sbr.rel (%p2561_p8) target bundleno = 3010 (0xbc2), region = 44  ;;  %s2668_s0 = sand.u32 (!%p2561_p8), 1, %s2442_s22  }
  0x66   : > { %s1864_s3 = sshll.u32 (!%p2561_p8), %s2668_s0, 4  ;;  %s310_s4 = scalar_lea.sflag (!%p2561_p8), [#allocation5], %s2668_s0 }
  0x67   : > { %s2674_s23 = scalar_lea.vmem (!%p2561_p8), [#allocation4], %s1864_s3 }
  0x6a   : > { %2417 = dma.done.wait (%p2551_p4), %s310_s4, 256  }
  0x6b   : > { %2419 = vsyncadd (%p2551_p4), %s310_s4, 4294967040  ;;  %s318_s2 = sand.u32 1, %s2542_s27   ;;  %s1865_s26 = sshll.u32 %s2668_s0, 3 }
  0x6c   : > { %s319_s7 = scalar_lea.sflag [#allocation8], %s318_s2  ;;  %s2682_s15 = scalar_lea.vmem [#allocation7], %s1865_s26 }
  0x6d   : > { %2421 = dma.done.wait (%p2551_p4), %s319_s7, 128  }
  0x6e   : > { %2423 = vsyncadd (%p2551_p4), %s319_s7, 4294967168 }
  0x6f   : > { %2425 = dma.done.wait (%p61_p1), [#allocation8], 2048  }
  0x70   : > { %2427 = vsyncadd (%p61_p1), [#allocation8], 4294965248 }
  0x71   : > { %2429 = dma.done.wait (%p61_p1), [#allocation11], 4096  }
  0x72   : > { %2431 = vsyncadd (%p61_p1), [#allocation11], 4294963200  ;;  %v2469_v0 = vmov 0.0   ;;  %v485_v1 = vld [vmem:[#allocation9 + $0x78] sm:$0xff]  ;;  %v484_v2 = vld [vmem:[#allocation9 + $0x70] sm:$0xff]  ;;  %vm391_vm0 = vcmask 523264  }
  0x73   : > { %459 = vmatprep.mubr.f32.mxu0 %v2469_v0  ;;  %1973 = vmatprep.subr.mxu1 %v485_v1  ;;  %v483_v3 = vld [vmem:[#allocation9 + $0x68] sm:$0xff]  ;;  %v390_v4 = vld [vmem:[#allocation10 + $0x78] sm:$0xff]  ;;  %v389_v5 = vld [vmem:[#allocation10 + $0x70] sm:$0xff]  ;;  %vm581_vm1 = vcmask 261120   ;;  %s2470_s27 = smov 96   ;;  %vm666_vm2 = vcmask 64512  }
  0x74   : > { %1974 = vmatpush3.msra.mxu1 %v485_v1  ;;  %411 = vmatprep.subr.mxu0 %v390_v4  ;;  %v388_v6 = vld [vmem:[#allocation10 + $0x68] sm:$0xff]  ;;  %v387_v7 = vld [vmem:[#allocation10 + $0x60] sm:$0xff]  ;;  %v386_v9 = vld [vmem:[#allocation10 + $0x58] sm:$0xff]  ;;  %s2471_s29 = smov 64   ;;  %s2472_s17 = smov 32  }
  0x75   : > { %1975 = vmatprep.subr.mxu1 %v484_v2  ;;  %v482_v8 = vld [vmem:[#allocation9 + $0x60] sm:$0xff]  ;;  %412 = vmatpush1.msra.mxu0 %v389_v5  ;;  %v385_v10 = vld [vmem:[#allocation10 + $0x50] sm:$0xff]  ;;  %v481_v11 = vld [vmem:[#allocation9 + $0x58] sm:$0xff]  ;;  %s367_s20 = scalar_lea.vmem [#allocation13], %s1864_s3  ;;  %s1906_s11 = sshll.u32 %s2450_s24, 8 }
  0x76   : > { %1976 = vmatpush3.msra.mxu1 %v484_v2  ;;  %413 = vmatprep.subr.mxu0 %v388_v6  ;;  %v384_v12 = vld [vmem:[#allocation10 + $0x48] sm:$0xff]  ;;  %v383_v13 = vld [vmem:[#allocation10 + $0x40] sm:$0xff]  ;;  %v480_v14 = vld [vmem:[#allocation9 + $0x50] sm:$0xff]  ;;  %s1713_s28 = sshll.u32 %s367_s20, 4  ;;  %s2802_s14 = scalar_lea.hbm %s2856_s6, %s1906_s11  ;;  %s2797_s28 = int_to_ptr.vmem [resolvable:$true] %s1713_s28 }
  0x77   : > { %1977 = vmatprep.subr.mxu1 %v483_v3  ;;  %414 = vmatpush1.msra.mxu0 %v387_v7  ;;  %v382_v15 = vld [vmem:[#allocation10 + $0x38] sm:$0xff]  ;;  %v381_v16 = vld [vmem:[#allocation10 + $0x30] sm:$0xff]  ;;  %v479_v17 = vld [vmem:[#allocation9 + $0x48] sm:$0xff]  ;;  %s1698_s10 = scalar_lea.sflag [#allocation6], %s2668_s0  ;;  %s2366_s8 = scalar_lea.vmem %s2797_s28, 256 }
  0x78   : > { %1978 = vmatpush3.msra.mxu1 %v483_v3  ;;  %415 = vmatprep.subr.mxu0 %v386_v9  ;;  %v380_v18 = vld [vmem:[#allocation10 + $0x28] sm:$0xff]  ;;  %v379_v19 = vld [vmem:[#allocation10 + $0x20] sm:$0xff]  ;;  %v378_v21 = vld [vmem:[#allocation10 + $0x18] sm:$0xff]  ;;  %p2367_p1 = scmp.ne.s32.totalorder %s2797_s28, %s2366_s8  ;;  %s2473_s24 = smov [#allocation13]  }
  0x79   : > { %1979 = vmatprep.subr.mxu1 %v482_v8  ;;  %416 = vmatpush1.msra.mxu0 %v385_v10  ;;  %v478_v20 = vld [vmem:[#allocation9 + $0x40] sm:$0xff]  ;;  %v377_v22 = vld [vmem:[#allocation10 + $0x10] sm:$0xff]  ;;  %v477_v23 = vld [vmem:[#allocation9 + $0x38] sm:$0xff]  ;;  %s2370_s18 = sshll.u32 %s2473_s24, 4  ;;  %s2371_s18 = int_to_ptr.vmem [resolvable:$false] %s2370_s18 }
  0x7a   : > { %1980 = vmatpush3.msra.mxu1 %v482_v8  ;;  %417 = vmatprep.subr.mxu0 %v384_v12  ;;  %v376_v24 = vld [vmem:[#allocation10 + $0x8] sm:$0xff]  ;;  %v375_v25 = vld [vmem:[#allocation10] sm:$0xff]  ;;  %v476_v26 = vld [vmem:[#allocation9 + $0x30] sm:$0xff]  ;;  %p2368_p4 = pnand %p2367_p1, %p2619_p5  ;;  %s2372_s3 = scalar_lea.vmem %s2371_s18, 512 }
  0x7b   : > { %1981 = vmatprep.subr.mxu1 %v481_v11  ;;  %418 = vmatpush1.msra.mxu0 %v383_v13  ;;  %v374_v27 = vld [vmem:[%s2682_s15] sm:$0xff]  ;;  %v475_v29 = vld [vmem:[#allocation9 + $0x28] sm:$0xff]  ;;  %v474_v30 = vld [vmem:[#allocation9 + $0x20] sm:$0xff]  ;;  %p2373_p2 = scmp.lt.s32.totalorder %s2797_s28, %s2371_s18  ;;  %p2374_p7 = scmp.lt.s32.totalorder %s2372_s3, %s2366_s8 }
  0x7c   : > { %1982 = vmatpush3.msra.mxu1 %v481_v11  ;;  %419 = vmatprep.subr.mxu0 %v382_v15  ;;  %v468_v28 = vld [vmem:[%s2674_s23] sm:$0xff]  ;;  %v473_v31 = vld [vmem:[#allocation9 + $0x18] sm:$0xff]  ;;  %v471_v33 = vld [vmem:[#allocation9 + $0x8] sm:$0xff]  ;;  %p2369_p8 = pneg %p2368_p4 }
  0x7d   : > { %1983 = vmatprep.subr.mxu1 %v480_v14  ;;  %420 = vmatpush1.msra.mxu0 %v381_v16  ;;  %v472_v32 = vld [vmem:[#allocation9 + $0x10] sm:$0xff]  ;;  %v470_v34 = vld [vmem:[#allocation9] sm:$0xff]  ;;  %v469_v35 = vld [vmem:[%s2674_s23 + $0x8] sm:$0xff]  ;;  %p2375_p9 = por %p2374_p7, %p2373_p2 }
  0x7e   : > { %1984 = vmatpush3.msra.mxu1 %v480_v14  ;;  %421 = vmatprep.subr.mxu0 %v380_v18  ;;  %v568_v57 = vld [vmem:[#allocation12 + $0x18] sm:$0xff]  ;;  %v567_v58 = vld [vmem:[#allocation12 + $0x10] sm:$0xff]  ;;  %v566_v3 = vld [vmem:[#allocation12 + $0x8] sm:$0xff] }
  0x7f   : > { %1985 = vmatprep.subr.mxu1 %v479_v17  ;;  %422 = vmatpush1.msra.mxu0 %v379_v19  ;;  %v565_v4 = vld [vmem:[#allocation12] sm:$0xff]  ;;  %p2376_p12 = pnand %p2375_p9, %p2369_p8 }
  0x80   : > { %1986 = vmatpush3.msra.mxu1 %v479_v17  ;;  %423 = vmatprep.subr.mxu0 %v378_v21 }
  0x81   : > { %1987 = vmatprep.subr.mxu1 %v478_v20  ;;  %424 = vmatpush1.msra.mxu0 %v377_v22  ;;  %v572_v22 = vld [vmem:[#allocation12 + $0x38] sm:$0xff] }
  0x82   : > { %1988 = vmatpush3.msra.mxu1 %v478_v20  ;;  %425 = vmatprep.subr.mxu0 %v376_v24 }
  0x83   : > { %1989 = vmatprep.subr.mxu1 %v477_v23  ;;  %426 = vmatpush1.msra.mxu0 %v375_v25 }
  0x84   : > { %1990 = vmatpush3.msra.mxu1 %v477_v23  ;;  %1870 = vmatmul.mubr.msk.f32.vlgmr.msra.gmra.mxu0 %vm391_vm0, %v374_v27 }
  0x85   : > { %1991 = vmatprep.subr.mxu1 %v476_v26  ;;  %2005 = vmatprep.mubr.f32.mxu1 %v468_v28 }
  0x86   : > { %1992 = vmatpush3.msra.mxu1 %v476_v26 }
  0x87   : > { %1993 = vmatprep.subr.mxu1 %v475_v29 }
  0x88   : > { %1994 = vmatpush3.msra.mxu1 %v475_v29  ;;  %v571_v29 = vld [vmem:[#allocation12 + $0x30] sm:$0xff] }
  0x89   : > { %1995 = vmatprep.subr.mxu1 %v474_v30 }
  0x8a   : > { %1996 = vmatpush3.msra.mxu1 %v474_v30  ;;  %v570_v30 = vld [vmem:[#allocation12 + $0x28] sm:$0xff] }
  0x8b   : > { %1997 = vmatprep.subr.mxu1 %v473_v31 }
  0x8c   : > { %1998 = vmatpush3.msra.mxu1 %v473_v31  ;;  %v569_v31 = vld [vmem:[#allocation12 + $0x20] sm:$0xff] }
  0x8d   : > { %1999 = vmatprep.subr.mxu1 %v472_v32 }
  0x8e   : > { %2000 = vmatpush3.msra.mxu1 %v472_v32 }
  0x8f   : > { %2001 = vmatprep.subr.mxu1 %v471_v33 }
  0x90   : > { %2002 = vmatpush3.msra.mxu1 %v471_v33 }
  0x91   : > { %2003 = vmatprep.subr.mxu1 %v470_v34 }
  0x92   : > { %2004 = vmatpush3.msra.mxu1 %v470_v34 }
  0x93   : > { %2006 = vmatmul.mubr.f32.vlgmr.msra.gmra.mxu1 %v469_v35 }
 0x144   : > { %v2699_v36 = vpop.f32.mrf.mxu0 }
 0x145   : > { %2008 = vmatprep.subr.msk.mxu1 %vm581_vm1, %v2699_v36 }
 0x146   : > { %v2703_v37 = vpop.f32.mrf.mxu0  ;;  %2009 = vmatpush3.xpose.msk.msra.mxu1 %vm581_vm1, %v2699_v36 }
 0x147   : > { %2013 = vmatprep.subr.mxu0 %v2703_v37  ;;  %2039 = vmatprep.subr.mxu1 %v568_v57 }
 0x148   : > { %2014 = vmatpush3.msra.mxu0 %v2703_v37 }
 0x153   : > { %v2007_v38 = vpop.f32.mrf.mxu1 }
 0x154   : > { %v2711_v41 = vmul.f32 0.17677669, %v2007_v38 }
 0x155   : > { %v552_v39 = vpop.f32.mrf.mxu1 }
 0x156   : > { %v2709_v40 = vmul.f32 0.17677669, %v552_v39 }
 0x158   : > { %772 = vrot.lane.b32.xlu1 %v2709_v40, %s2470_s27  ;;  %2010 = vmatprep.mubr.msk.f32.mxu1 %vm581_vm1, %v2709_v40 }
 0x159   : > { %2011 = vmatmul.mubr.msk.f32.vlgmr.msra.gmra.mxu1 %vm581_vm1, %v2711_v41 }
 0x15a   : > { %2040 = vmatpush3.msra.mxu1 %v568_v57  ;;  %v575_v57 = vld [vmem:[#allocation12 + $0x50] sm:$0xff] }
 0x15b   : > { %2041 = vmatprep.subr.mxu1 %v567_v58 }
 0x15c   : > { %2042 = vmatpush3.msra.mxu1 %v567_v58 }
 0x15d   : > { %2043 = vmatprep.subr.mxu1 %v566_v3 }
 0x15e   : > { %2044 = vmatpush3.msra.mxu1 %v566_v3  ;;  %v573_v3 = vld [vmem:[#allocation12 + $0x40] sm:$0xff] }
 0x15f   : > { %2045 = vmatprep.subr.mxu1 %v565_v4 }
 0x160   : > { %2046 = vmatpush3.msra.mxu1 %v565_v4 }
 0x1ca   : > { %v773_v59 = vpop.permute.xlu1 %772 }
 0x219   : > { %v2012_v42 = vpop.f32.mrf.mxu1 }
 0x21a   : > { %v670_v45 = vsel %vm666_vm2, %v2012_v42, -inf }
 0x21b   : > { %v657_v43 = vpop.f32.mrf.mxu1 }
 0x21c   : > { %v667_v44 = vsel %vm666_vm2, %v657_v43, -inf }
 0x21d   : > { %668 = vmax.xlane.f32.xlu0 %v667_v44 }
 0x221   : > { %671 = vmax.xlane.f32.xlu0 %v670_v45 }
 0x237   : > { %776 = vrot.lane.b32.xlu0 %v2699_v36, %s2470_s27 }
 0x2a6   : > { %v669_v46 = vpop.xlane.xlu0 %668 }
 0x2a7   : > { %v673_v47 = vsub.f32 %v657_v43, %v669_v46 }
 0x2a9   : > { %v675_v50 = vmul.f32 1.442695, %v673_v47 }
 0x2aa   : > { %v672_v48 = vpop.xlane.xlu0 %671 }
 0x2ab   : > { %v674_v49 = vsub.f32 %v2012_v42, %v672_v48 }
 0x2ad   : > { %v677_v51 = vmul.f32 1.442695, %v674_v49 }
 0x2ae   : > { %v777_v52 = vpop.permute.xlu0 %776 }
 0x2af   : > { %2200 = vpow2.f32 %v677_v51  ;;  %2018 = vmatprep.subr.msk.mxu0 %vm581_vm1, %v777_v52 }
 0x2b0   : > { %2202 = vpow2.f32 %v675_v50 }
 0x2bc   : > { %v2201_v53 = vpop.eup %2200 }
 0x2bd   : > { %v682_v54 = vsel %vm666_vm2, %v2201_v53, 0.0  ;;  %v2203_v55 = vpop.eup %2202 }
 0x2be   : > { %683 = vadd.xlane.f32.xlu1 %v682_v54  ;;  %v679_v56 = vsel %vm666_vm2, %v2203_v55, 0.0 }
 0x2c2   : > { %680 = vadd.xlane.f32.xlu1 %v679_v56 }
 0x2d3   : > { %774 = vrot.lane.b32.xlu1 %v2711_v41, %s2470_s27 }
 0x347   : > { %v684_v60 = vpop.xlane.xlu1 %683 }
 0x348   : > { %2204 = vrcp.f32 %v684_v60 }
 0x34b   : > { %v681_v61 = vpop.xlane.xlu1 %680 }
 0x34c   : > { %2206 = vrcp.f32 %v681_v61 }
 0x34f   : > { %v775_v2 = vpop.permute.xlu1 %774 }
 0x355   : > { %v2205_v62 = vpop.eup %2204 }
 0x356   : > { %v690_v1 = vmul.f32 %v2205_v62, %v2201_v53 }
 0x359   : > { %v2207_v63 = vpop.eup %2206 }
 0x35a   : > { %v689_v0 = vmul.f32 %v2207_v63, %v2203_v55 }
 0x35c   : > { %2015 = vmatprep.mubr.msk.f32.mxu0 %vm666_vm2, %v689_v0 }
 0x35d   : > { %2016 = vmatmul.mubr.msk.f32.vlgmr.msra.gmra.mxu0 %vm666_vm2, %v690_v1 }
 0x35e   : > { %2019 = vmatpush3.xpose.msk.msra.mxu0 %vm581_vm1, %v777_v52  ;;  %2020 = vmatprep.mubr.msk.f32.mxu0 %vm581_vm1, %v773_v59 }
 0x361   : > { %2021 = vmatmul.mubr.msk.f32.vlgmr.msra.gmra.mxu0 %vm581_vm1, %v775_v2  ;;  %v574_v2 = vld [vmem:[#allocation12 + $0x48] sm:$0xff] }
 0x41d   : > { %v2017_v5 = vpop.f32.mrf.mxu0 }
 0x41f   : > { %v763_v6 = vpop.f32.mrf.mxu0 }
 0x420   : > { %2047 = vmatprep.mubr.msk.f32.mxu1 %vm581_vm1, %v763_v6 }
 0x421   : > { %v2022_v7 = vpop.f32.mrf.mxu0  ;;  %2048 = vmatmul.mubr.msk.f32.vlgmr.msra.gmra.mxu1 %vm581_vm1, %v2017_v5 }
 0x422   : > { %v862_v8 = vsel %vm666_vm2, %v2022_v7, -inf }
 0x423   : > { %863 = vmax.xlane.f32.xlu0 %v862_v8  ;;  %v850_v9 = vpop.f32.mrf.mxu0 }
 0x424   : > { %v859_v10 = vsel %vm666_vm2, %v850_v9, -inf }
 0x425   : > { %860 = vmax.xlane.f32.xlu1 %v859_v10 }
 0x436   : > { %884 = vrot.lane.b32.xlu1 %v2703_v37, %s2470_s27 }
 0x43a   : > { %1130 = vrot.lane.b32.xlu1 %v2709_v40, %s2471_s29 }
 0x43e   : > { %1132 = vrot.lane.b32.xlu1 %v2711_v41, %s2471_s29 }
 0x4ac   : > { %v864_v11 = vpop.xlane.xlu0 %863 }
 0x4ad   : > { %v866_v12 = vsub.f32 %v2022_v7, %v864_v11 }
 0x4ae   : > { %v861_v13 = vpop.xlane.xlu1 %860 }
 0x4af   : > { %v865_v14 = vsub.f32 %v850_v9, %v861_v13  ;;  %v869_v15 = vmul.f32 1.442695, %v866_v12 }
 0x4b1   : > { %v867_v16 = vmul.f32 1.442695, %v865_v14 }
 0x4b2   : > { %v885_v17 = vpop.permute.xlu1 %884 }
 0x4b3   : > { %2208 = vpow2.f32 %v867_v16  ;;  %2023 = vmatprep.subr.mxu0 %v885_v17 }
 0x4b4   : > { %2024 = vmatpush3.msra.mxu0 %v885_v17  ;;  %2210 = vpow2.f32 %v869_v15 }
 0x4b5   : > { %2028 = vmatprep.subr.mxu0 %v572_v22 }
 0x4b6   : > { %v1131_v34 = vpop.permute.xlu1 %1130 }
 0x4ba   : > { %v1133_v38 = vpop.permute.xlu1 %1132 }
 0x4c0   : > { %v2209_v18 = vpop.eup %2208 }
 0x4c1   : > { %v871_v19 = vsel %vm666_vm2, %v2209_v18, 0.0  ;;  %v2211_v20 = vpop.eup %2210 }
 0x4c2   : > { %872 = vadd.xlane.f32.xlu0 %v871_v19  ;;  %v874_v21 = vsel %vm666_vm2, %v2211_v20, 0.0 }
 0x4c6   : > { %875 = vadd.xlane.f32.xlu0 %v874_v21 }
 0x4dc   : > { %1134 = vrot.lane.b32.xlu0 %v2699_v36, %s2471_s29 }
 0x4e1   : > { %v2049_v4 = vpop.f32.mrf.mxu1 }
 0x4e3   : > { %v1121_v5 = vpop.f32.mrf.mxu1 }
 0x54b   : > { %v873_v23 = vpop.xlane.xlu0 %872 }
 0x54c   : > { %2212 = vrcp.f32 %v873_v23  ;;  %v579_v23 = vld [vmem:[#allocation12 + $0x70] sm:$0xff] }
 0x54f   : > { %v876_v24 = vpop.xlane.xlu0 %875 }
 0x550   : > { %2214 = vrcp.f32 %v876_v24 }
 0x553   : > { %v1135_v32 = vpop.permute.xlu0 %1134 }
 0x559   : > { %v2213_v25 = vpop.eup %2212 }
 0x55a   : > { %v881_v26 = vmul.f32 %v2213_v25, %v2209_v18 }
 0x55c   : > { %2025 = vmatprep.mubr.msk.f32.mxu0 %vm666_vm2, %v881_v26 }
 0x55d   : > { %v2215_v27 = vpop.eup %2214 }
 0x55e   : > { %v882_v28 = vmul.f32 %v2215_v27, %v2211_v20 }
 0x560   : > { %2026 = vmatmul.mubr.msk.f32.vlgmr.msra.gmra.mxu0 %vm666_vm2, %v882_v28 }
 0x561   : > { %2029 = vmatpush3.msra.mxu0 %v572_v22 }
 0x562   : > { %2030 = vmatprep.subr.mxu0 %v571_v29 }
 0x563   : > { %2031 = vmatpush3.msra.mxu0 %v571_v29 }
 0x564   : > { %2032 = vmatprep.subr.mxu0 %v570_v30 }
 0x565   : > { %2033 = vmatpush3.msra.mxu0 %v570_v30  ;;  %v578_v30 = vld [vmem:[#allocation12 + $0x68] sm:$0xff] }
 0x566   : > { %2034 = vmatprep.subr.mxu0 %v569_v31 }
 0x567   : > { %2035 = vmatpush3.msra.mxu0 %v569_v31  ;;  %v577_v31 = vld [vmem:[#allocation12 + $0x60] sm:$0xff] }
 0x568   : > { %2050 = vmatprep.subr.msk.mxu0 %vm581_vm1, %v1135_v32 }
 0x620   : > { %v2027_v33 = vpop.f32.mrf.mxu0 }
 0x622   : > { %v959_v35 = vpop.f32.mrf.mxu0 }
 0x623   : > { %2036 = vmatprep.mubr.msk.f32.mxu0 %vm581_vm1, %v959_v35 }
 0x624   : > { %2037 = vmatmul.mubr.msk.f32.vlgmr.msra.gmra.mxu0 %vm581_vm1, %v2027_v33 }
 0x625   : > { %2051 = vmatpush3.xpose.msk.msra.mxu0 %vm581_vm1, %v1135_v32  ;;  %2052 = vmatprep.mubr.msk.f32.mxu0 %vm581_vm1, %v1131_v34 }
 0x628   : > { %2053 = vmatmul.mubr.msk.f32.vlgmr.msra.gmra.mxu0 %vm581_vm1, %v1133_v38 }
 0x6e4   : > { %v2755_v39 = vpop.f32.mrf.mxu0 }
 0x6e5   : > { %v1127_v35 = vadd.f32 %v2049_v4, %v2755_v39 }
 0x6e6   : > { %v2757_v42 = vpop.f32.mrf.mxu0 }
 0x6e8   : > { %v2054_v43 = vpop.f32.mrf.mxu0 }
 0x6e9   : > { %v1220_v44 = vsel %vm666_vm2, %v2054_v43, -inf }
 0x6ea   : > { %1221 = vmax.xlane.f32.xlu0 %v1220_v44  ;;  %v1208_v45 = vpop.f32.mrf.mxu0 }
 0x6eb   : > { %v1217_v46 = vsel %vm666_vm2, %v1208_v45, -inf }
 0x6ec   : > { %1218 = vmax.xlane.f32.xlu1 %v1217_v46  ;;  %v1899_v46 = vld [vmem:[%s2855_s5] ss:$0 sm:$0xff] }
 0x6fd   : > { %1241 = vrot.lane.b32.xlu1 %v2703_v37, %s2471_s29 }
 0x701   : > { %1408 = vrot.lane.b32.xlu1 %v2709_v40, %s2472_s17 }
 0x705   : > { %1410 = vrot.lane.b32.xlu1 %v2711_v41, %s2472_s17  ;;  %v576_v41 = vld [vmem:[#allocation12 + $0x58] sm:$0xff] }
 0x706   : > { %2060 = vmatprep.subr.mxu0 %v576_v41 }
 0x707   : > { %2061 = vmatpush3.msra.mxu0 %v576_v41 }
 0x708   : > { %2062 = vmatprep.subr.mxu0 %v575_v57 }
 0x709   : > { %2063 = vmatpush3.msra.mxu0 %v575_v57 }
 0x70a   : > { %2064 = vmatprep.subr.mxu0 %v574_v2 }
 0x70b   : > { %2065 = vmatpush3.msra.mxu0 %v574_v2 }
 0x70c   : > { %2066 = vmatprep.subr.mxu0 %v573_v3 }
 0x70d   : > { %2067 = vmatpush3.msra.mxu0 %v573_v3 }
 0x773   : > { %v1222_v47 = vpop.xlane.xlu0 %1221 }
 0x774   : > { %v1224_v48 = vsub.f32 %v2054_v43, %v1222_v47  ;;  %v1122_v43 = vadd.f32 %v1121_v5, %v2757_v42 }
 0x775   : > { %v1219_v49 = vpop.xlane.xlu1 %1218 }
 0x776   : > { %v1227_v50 = vmul.f32 1.442695, %v1224_v48  ;;  %v1223_v51 = vsub.f32 %v1208_v45, %v1219_v49 }
 0x778   : > { %2216 = vpow2.f32 %v1227_v50  ;;  %v1225_v52 = vmul.f32 1.442695, %v1223_v51 }
 0x779   : > { %v1242_v53 = vpop.permute.xlu1 %1241 }
 0x77a   : > { %2218 = vpow2.f32 %v1225_v52  ;;  %2055 = vmatprep.subr.mxu1 %v1242_v53 }
 0x77b   : > { %2056 = vmatpush3.msra.mxu1 %v1242_v53 }
 0x77d   : > { %v1409_v63 = vpop.permute.xlu1 %1408 }
 0x785   : > { %v2217_v54 = vpop.eup %2216 }
 0x786   : > { %v1232_v55 = vsel %vm666_vm2, %v2217_v54, 0.0 }
 0x787   : > { %v2219_v56 = vpop.eup %2218  ;;  %1233 = vadd.xlane.f32.xlu0 %v1232_v55 }
 0x788   : > { %v1229_v40 = vsel %vm666_vm2, %v2219_v56, 0.0 }
 0x78b   : > { %1230 = vadd.xlane.f32.xlu0 %v1229_v40 }
 0x7a1   : > { %1412 = vrot.lane.b32.xlu0 %v2699_v36, %s2472_s17  ;;  %v1411_v36 = vpop.permute.xlu1 %1410 }
 0x810   : > { %v1234_v58 = vpop.xlane.xlu0 %1233 }
 0x811   : > { %2220 = vrcp.f32 %v1234_v58 }
 0x814   : > { %v1231_v59 = vpop.xlane.xlu0 %1230 }
 0x815   : > { %2222 = vrcp.f32 %v1231_v59 }
 0x818   : > { %v1413_v60 = vpop.permute.xlu0 %1412 }
 0x819   : > { %2071 = vmatprep.subr.msk.mxu1 %vm581_vm1, %v1413_v60 }
 0x81e   : > { %v2221_v61 = vpop.eup %2220 }
 0x81f   : > { %v1240_v1 = vmul.f32 %v2221_v61, %v2217_v54 }
 0x822   : > { %v2223_v62 = vpop.eup %2222 }
 0x823   : > { %v1239_v0 = vmul.f32 %v2223_v62, %v2219_v56 }
 0x825   : > { %2057 = vmatprep.mubr.msk.f32.mxu1 %vm666_vm2, %v1239_v0 }
 0x826   : > { %2058 = vmatmul.mubr.msk.f32.vlgmr.msra.gmra.mxu1 %vm666_vm2, %v1240_v1 }
 0x827   : > { %2072 = vmatpush3.xpose.msk.msra.mxu1 %vm581_vm1, %v1413_v60  ;;  %2073 = vmatprep.mubr.msk.f32.mxu1 %vm581_vm1, %v1409_v63 }
 0x82a   : > { %2074 = vmatmul.mubr.msk.f32.vlgmr.msra.gmra.mxu1 %vm581_vm1, %v1411_v36 }
 0x8e6   : > { %v2059_v6 = vpop.f32.mrf.mxu1 }
 0x8e8   : > { %v1316_v7 = vpop.f32.mrf.mxu1 }
 0x8e9   : > { %2068 = vmatprep.mubr.msk.f32.mxu0 %vm581_vm1, %v1316_v7 }
 0x8ea   : > { %2069 = vmatmul.mubr.msk.f32.vlgmr.msra.gmra.mxu0 %vm581_vm1, %v2059_v6  ;;  %v2075_v8 = vpop.f32.mrf.mxu1 }
 0x8eb   : > { %v1498_v9 = vsel %vm666_vm2, %v2075_v8, -inf }
 0x8ec   : > { %1499 = vmax.xlane.f32.xlu0 %v1498_v9  ;;  %v1486_v10 = vpop.f32.mrf.mxu1 }
 0x8ed   : > { %v1495_v11 = vsel %vm666_vm2, %v1486_v10, -inf }
 0x8ee   : > { %1496 = vmax.xlane.f32.xlu1 %v1495_v11 }
 0x8ff   : > { %1519 = vrot.lane.b32.xlu1 %v2703_v37, %s2472_s17  ;;  %v580_v37 = vld [vmem:[#allocation12 + $0x78] sm:$0xff] }
 0x900   : > { %2081 = vmatprep.subr.mxu0 %v580_v37 }
 0x901   : > { %2082 = vmatpush3.msra.mxu0 %v580_v37 }
 0x902   : > { %2083 = vmatprep.subr.mxu0 %v579_v23 }
 0x903   : > { %2084 = vmatpush3.msra.mxu0 %v579_v23 }
 0x904   : > { %2085 = vmatprep.subr.mxu0 %v578_v30 }
 0x905   : > { %2086 = vmatpush3.msra.mxu0 %v578_v30 }
 0x906   : > { %2087 = vmatprep.subr.mxu0 %v577_v31 }
 0x907   : > { %2088 = vmatpush3.msra.mxu0 %v577_v31 }
 0x975   : > { %v1500_v12 = vpop.xlane.xlu0 %1499 }
 0x976   : > { %v1502_v13 = vsub.f32 %v2075_v8, %v1500_v12 }
 0x977   : > { %v1497_v14 = vpop.xlane.xlu1 %1496 }
 0x978   : > { %v1501_v15 = vsub.f32 %v1486_v10, %v1497_v14  ;;  %v1505_v16 = vmul.f32 1.442695, %v1502_v13 }
 0x97a   : > { %v1503_v17 = vmul.f32 1.442695, %v1501_v15 }
 0x97b   : > { %v1520_v18 = vpop.permute.xlu1 %1519 }
 0x97c   : > { %2224 = vpow2.f32 %v1503_v17  ;;  %2076 = vmatprep.subr.mxu1 %v1520_v18 }
 0x97d   : > { %2077 = vmatpush3.msra.mxu1 %v1520_v18  ;;  %2226 = vpow2.f32 %v1505_v16 }
 0x989   : > { %v2225_v19 = vpop.eup %2224 }
 0x98a   : > { %v1507_v20 = vsel %vm666_vm2, %v2225_v19, 0.0  ;;  %v2227_v21 = vpop.eup %2226 }
 0x98b   : > { %1508 = vadd.xlane.f32.xlu0 %v1507_v20  ;;  %v1510_v22 = vsel %vm666_vm2, %v2227_v21, 0.0 }
 0x98f   : > { %1511 = vadd.xlane.f32.xlu0 %v1510_v22 }
 0x9aa   : > { %v2070_v34 = vpop.f32.mrf.mxu0 }
 0x9ab   : > { %v1407_v44 = vadd.f32 %v2070_v34, %v1127_v35 }
 0x9ac   : > { %v1397_v38 = vpop.f32.mrf.mxu0 }
 0x9ad   : > { %v1406_v47 = vadd.f32 %v1397_v38, %v1122_v43 }
 0xa14   : > { %v1509_v24 = vpop.xlane.xlu0 %1508 }
 0xa15   : > { %2228 = vrcp.f32 %v1509_v24 }
 0xa18   : > { %v1512_v25 = vpop.xlane.xlu0 %1511 }
 0xa19   : > { %2230 = vrcp.f32 %v1512_v25 }
 0xa22   : > { %v2229_v26 = vpop.eup %2228 }
 0xa23   : > { %v1517_v27 = vmul.f32 %v2229_v26, %v2225_v19 }
 0xa25   : > { %2078 = vmatprep.mubr.msk.f32.mxu1 %vm666_vm2, %v1517_v27 }
 0xa26   : > { %v2231_v28 = vpop.eup %2230 }
 0xa27   : > { %v1518_v29 = vmul.f32 %v2231_v28, %v2227_v21 }
 0xa29   : > { %2079 = vmatmul.mubr.msk.f32.vlgmr.msra.gmra.mxu1 %vm666_vm2, %v1518_v29 }
 0xae9   : > { %v2080_v32 = vpop.f32.mrf.mxu1 }
 0xaeb   : > { %v1594_v33 = vpop.f32.mrf.mxu1 }
 0xaec   : > { %2089 = vmatprep.mubr.msk.f32.mxu0 %vm581_vm1, %v1594_v33 }
 0xaed   : > { %2090 = vmatmul.mubr.msk.f32.vlgmr.msra.gmra.mxu0 %vm581_vm1, %v2080_v32 }
 0xbad   : > { %v2091_v45 = vpop.f32.mrf.mxu0 }
 0xbae   : > { %v1685_v48 = vadd.f32 %v2091_v45, %v1407_v44 }
 0xbaf   : > { %v1675_v49 = vpop.f32.mrf.mxu0 }
 0xbb0   : > { %v1694_v50 = vadd.f32 %v1899_v46, %v1685_v48  ;;  %v1684_v39 = vadd.f32 %v1675_v49, %v1406_v47 }
 0xbb2   : > { %1696 = vst [vmem:[%s367_s20 + $0x8] sm:$0xff] %v1694_v50  ;;  %v1693_v42 = vadd.f32 %v1899_v46, %v1684_v39 }
 0xbb4   : > { %1695 = vst [vmem:[%s367_s20] sm:$0xff] %v1693_v42 }
 0xbb5   : > { %2379 = shalt.err (!%p2376_p12)
}
 0xbb6   : > { %s2380_s4 = scalar_lea.hbm %s2802_s14, 256  ;;  %s2384_s26 = scalar_lea.hbm %s2856_s6, 512 }
 0xbb7   : > { %p2381_p13 = scmp.ne.s32.totalorder %s2802_s14, %s2380_s4  ;;  %p2385_p11 = scmp.lt.s32.totalorder %s2802_s14, %s2856_s6 }
 0xbb8   : > { %p2386_p3 = scmp.lt.s32.totalorder %s2384_s26, %s2380_s4 }
 0xbb9   : > { %p2382_p0 = pnand %p2381_p13, %p2619_p5 }
 0xbba   : > { %p2387_p1 = por %p2386_p3, %p2385_p11 }
 0xbbb   : > { %p2383_p10 = pneg %p2382_p0 }
 0xbbd   : > { %p2388_p4 = pnand %p2387_p1, %p2383_p10 }
 0xbbf   : > { %2391 = shalt.err (!%p2388_p4)
}
 0xbc0   : > { %s2474_s27 = smov 128   ;;  %s2475_s29 = smov 8  }
 0xbc1   : > { %2108 = dma.vmem_to_hbm [thread:$0]  (%p2619_p5), %s2797_s28, 256, %s2802_s14, %s1698_s10, %s2474_s27, %s2474_s27, %s2475_s29  }
 0xbc2 PF: > { %s2884_s17 = sld [smem:[#allocation20_spill]]  ;;  %s1728_s9 = sand.u32 1, %s2438_s21  }
 0xbc3   : > { %s1729_s16 = scalar_lea.sflag [#allocation6], %s1728_s9 }
 0xbc8   : > { %p2885_p8 = scmp.ge.s32.totalorder %s2884_s17, 2 }
 0xbca   : > { %p2128_p2 = pnand %p2885_p8, %p2556_p6 }
 0xbcc   : > { %p2129_p7 = pneg %p2128_p2 }
 0xbce   : > { %2433 = dma.done.wait (%p2129_p7), %s1729_s16, 256  }
 0xbcf   : > { %2435 = vsyncadd (%p2129_p7), %s1729_s16, 4294967040  ;;  %s26_s26 = sadd.s32 1, %s2884_s17   ;;  %s2886_s20 = sld [smem:[#allocation19_spill]] }
 0xbd0   : > { %p23_p9 = scmp.ge.s32.totalorder %s26_s26, 4   ;;  %s2887_s23 = sld [smem:[#allocation22_spill]] }
 0xbd1   : > { %s2888_s19 = sld [smem:[#allocation21_spill]]  ;;  %s2889_s21 = smov %s2442_s22 }
 0xbd2   : > { %s2891_s24 = smov %s2454_s25 }
 0xbd3   :  { %25 = sbr.rel (!%p23_p9) target bundleno = 14 (0xe), region = 118 }
 0xbd5   : > { %s2890_s22 = smov %s2886_s20 }
 0xbd7   : > { %s2892_s25 = smov %s2888_s19 }
 0xbd8   :  { %1734 = vsyncpa [#allocation5], 1 }
 0xbd9   :  { %1736 = vsyncpa [#allocation5 + $0x1], 1 }
 0xbda   :  { %1737 = vsyncpa [#allocation8], 1 }
 0xbdb   :  { %1739 = vsyncpa [#allocation8 + $0x1], 1 }
 0xbdc   :  { %1740 = vsyncpa [#allocation11], 1 }
 0xbdd   :  { %1741 = vsyncpa [#allocation6], 1 }
 0xbde   :  { %1743 = vsyncpa [#allocation6 + $0x1], 1 }

</bundles_post_ra>
